<compile_context>
chip_gen: v7x
topology: tpu7x:2x2x1
jax: 0.10.0
libtpu: 0.0.40
codegen_flags: <defaults>
</compile_context>

<pallas_src>
import functools

import numpy as np

import jax
import jax.numpy as jnp
from jax.experimental import pallas as pl
from jax.experimental.pallas import tpu as pltpu


# ---------------------------------------------------------------------------
# Kernels
# ---------------------------------------------------------------------------

def _pad_rows_kernel(x_ref, o_ref, *, pad_left, pad_right):
    """General path: (R, W_eff) -> (R, W_out) with static edge replication.

    Body/pad regions are written with static-offset stores; for the large-W
    case the body store dominates and is (nearly) unmasked.  The small-W case
    is handled by the lane-packed kernel below instead.
    """
    rows, w_eff = x_ref.shape
    x = x_ref[...]
    o_ref[:, pad_left:pad_left + w_eff] = x
    if pad_left > 0:
        o_ref[:, :pad_left] = jnp.broadcast_to(x[:, :1], (rows, pad_left))
    if pad_right > 0:
        o_ref[:, pad_left + w_eff:] = jnp.broadcast_to(
            x[:, w_eff - 1:w_eff], (rows, pad_right))


def _packed_kernel(x_ref, sel_ref, o_ref, *, exact_f32):
    """Lane-packed path: (R, G*W_eff) x (G*W_eff, G*W_out) -> (R, G*W_out).

    `sel` is a static one-hot matrix encoding the replication-pad source lane of
    every output lane, so the whole tile is produced by MXU matmul(s) and
    written with a single lane-dense (>=128-lane) store.

    f32 inputs are split into three exact bf16 components (hi/mid/lo); each
    partial matmul has exactly one nonzero term per output and accumulates in
    f32, so the copy is bit-exact independent of the MXU f32 mode.
    NOTE: non-finite values (inf/nan) inside a packed row-group would propagate
    through the one-hot matmul (0*inf = nan); typical activations are finite.
    """
    x = x_ref[...]
    sel = sel_ref[...]
    if exact_f32:
        hi = x.astype(jnp.bfloat16)
        r1 = x - hi.astype(jnp.float32)
        mid = r1.astype(jnp.bfloat16)
        lo = (r1 - mid.astype(jnp.float32)).astype(jnp.bfloat16)
        acc = jnp.dot(hi, sel, preferred_element_type=jnp.float32)
        acc = acc + jnp.dot(mid, sel, preferred_element_type=jnp.float32)
        acc = acc + jnp.dot(lo, sel, preferred_element_type=jnp.float32)
    else:
        acc = jnp.dot(x, sel, preferred_element_type=jnp.float32)
    o_ref[...] = acc.astype(o_ref.dtype)


# ---------------------------------------------------------------------------
# Tiling / sizing helpers
# ---------------------------------------------------------------------------

def _round_up(x, m):
    return (x + m - 1) // m * m


def _choose_tile_rows(num_rows, w_in, w_out, itemsize, min_grid_steps=4):
    """Dtype-packed row tile: ~2 MiB of in+out data per grid step, capped so the
    row grid keeps >= min_grid_steps steps (megacore balance on v7x)."""
    pack = {1: 32, 2: 16}.get(itemsize, 8)
    if num_rows <= pack:
        return num_rows
    budget = 2 << 20  # ~1-2 MiB tiles already reach ~85% of HBM roofline
    bytes_per_row = max((w_in + w_out) * itemsize, 1)
    tile = max(pack, budget // bytes_per_row // pack * pack)
    cap = max(pack, num_rows // min_grid_steps // pack * pack)
    return max(pack, min(tile, cap, num_rows))


def _sanitize_tile_rows(tile_rows, num_rows, pack):
    tr = max(1, min(int(tile_rows), num_rows))
    if tr == num_rows:
        return tr
    tr = max(pack, tr // pack * pack)
    return min(tr, num_rows)


def _vmem_limit_bytes(tile_rows, widths, itemsize, extra_bytes=0):
    """Scoped-VMEM request derived from the double-buffered tile footprint."""
    per_step = sum(tile_rows * _round_up(w, 128) * itemsize for w in widths)
    limit = 3 * per_step + extra_bytes + (2 << 20)  # 2 bufs + slack + headroom
    return int(min(48 << 20, max(8 << 20, limit)))


def _pick_group(rows, w_out):
    """Largest divisor G of `rows` keeping rows/G >= 8 and G*w_out <= 1024."""
    gmax = min(rows // 8, max(1, 1024 // w_out))
    best = 1
    for g in range(1, gmax + 1):
        if rows % g == 0:
            best = g
            if g * w_out >= 512:
                break
    return best


def _solve_regions(w, left, right):
    """Static source-column map of the sequential left-then-right pad/crop.

    Returns (pad_left, body_lo, body_hi, pad_right): output = pad_left copies of
    column body_lo, then columns [body_lo, body_hi), then pad_right copies of
    column body_hi - 1.  Handles all non-empty combinations, including
    degenerate ones such as (left > 0, right <= -W).
    """
    w1 = w + left
    w2 = w1 + right
    assert w1 >= 1 and w2 >= 1, (
        "padding crops away the entire width (empty tensors not supported)")
    q = np.arange(w2)
    src = np.clip(np.clip(q, 0, w1 - 1) - left, 0, w - 1)
    lo, hi = int(src[0]), int(src[-1])
    if lo == hi:
        return w2 - 1, lo, lo + 1, 0
    pad_l = int(np.argmax(src != lo)) - 1
    pad_r = int(np.argmax(src[::-1] != hi)) - 1
    assert pad_l + (hi + 1 - lo) + pad_r == w2
    return pad_l, lo, hi + 1, pad_r


# ---------------------------------------------------------------------------
# pallas_call wrappers
# ---------------------------------------------------------------------------

def _pad_row_tiled(x2, rows, w_eff, w_out, pad_l, pad_r, itemsize, pack,
                   tile_rows):
    if tile_rows is None:
        tr = _choose_tile_rows(rows, w_eff, w_out, itemsize)
    else:
        tr = _sanitize_tile_rows(tile_rows, rows, pack)
    grid = (pl.cdiv(rows, tr),)
    kernel = functools.partial(_pad_rows_kernel, pad_left=pad_l,
                               pad_right=pad_r)
    return pl.pallas_call(
        kernel,
        out_shape=jax.ShapeDtypeStruct((rows, w_out), x2.dtype),
        grid=grid,
        in_specs=[pl.BlockSpec((tr, w_eff), lambda i: (i, 0))],
        out_specs=pl.BlockSpec((tr, w_out), lambda i: (i, 0)),
        compiler_params=pltpu.CompilerParams(
            dimension_semantics=("parallel",),
            vmem_limit_bytes=_vmem_limit_bytes(tr, (w_eff, w_out), itemsize),
            allow_input_fusion=[True]),
        cost_estimate=pl.CostEstimate(
            flops=0, transcendentals=0,
            bytes_accessed=rows * (w_eff + w_out) * itemsize),
    )(x2)


def _pad_lane_packed(x2, rows, w_eff, w_out, pad_l, g, itemsize, pack,
                     tile_rows):
    dtype = x2.dtype
    rows_p = rows // g
    win, wout = g * w_eff, g * w_out
    xp = x2.reshape(rows_p, win)  # free row-major reshape

    # Static one-hot "gather" matrix: sel[s, d] = 1 iff output lane d reads
    # input lane s (0/1 are exact in bf16).
    dst = np.arange(wout)
    grp, pos = dst // w_out, dst % w_out
    src = grp * w_eff + np.clip(pos - pad_l, 0, w_eff - 1)
    sel_np = np.zeros((win, wout), dtype=np.float32)
    sel_np[src, dst] = 1.0
    sel = jnp.asarray(sel_np, dtype=jnp.bfloat16)

    if tile_rows is None:
        tr = _choose_tile_rows(rows_p, win, wout, itemsize)
    else:
        tr = _sanitize_tile_rows(tile_rows, rows_p, pack)
    grid = (pl.cdiv(rows_p, tr),)
    exact_f32 = bool(dtype == jnp.float32)
    kernel = functools.partial(_packed_kernel, exact_f32=exact_f32)
    sel_bytes = _round_up(win, 8) * _round_up(wout, 128) * 2

    out = pl.pallas_call(
        kernel,
        out_shape=jax.ShapeDtypeStruct((rows_p, wout), dtype),
        grid=grid,
        in_specs=[pl.BlockSpec((tr, win), lambda i: (i, 0)),
                  pl.BlockSpec((win, wout), lambda i: (0, 0))],
        out_specs=pl.BlockSpec((tr, wout), lambda i: (i, 0)),
        compiler_params=pltpu.CompilerParams(
            dimension_semantics=("parallel",),
            vmem_limit_bytes=_vmem_limit_bytes(
                tr, (win, wout), itemsize, extra_bytes=2 * sel_bytes),
            allow_input_fusion=[True, False]),
        cost_estimate=pl.CostEstimate(
            flops=2 * rows_p * win * wout * (3 if exact_f32 else 1),
            transcendentals=0,
            bytes_accessed=rows_p * (win + wout) * itemsize),
    )(xp, sel)
    return out.reshape(rows, w_out)


def replication_pad1d_naive(x, padding, detach=False, tile_rows=None):
    assert x.ndim == 3 and len(padding) == 2
    del detach  # autograd-only flag; forward values are identical.
    left, right = int(padding[0]), int(padding[1])
    n, c, w = x.shape
    if left == 0 and right == 0:
        return x

    pad_l, body_lo, body_hi, pad_r = _solve_regions(w, left, right)
    w_eff = body_hi - body_lo
    w_out = pad_l + w_eff + pad_r
    rows = n * c
    itemsize = jnp.dtype(x.dtype).itemsize
    pack = {1: 32, 2: 16}.get(itemsize, 8)

    x2 = x.reshape(rows, w)
    if body_lo > 0 or body_hi < w:
        # Crop in the wrapper; allow_input_fusion lets XLA fuse this slice into
        # the pallas_call input so cropped columns are never read from HBM.
        x2 = x2[:, body_lo:body_hi]

    # Lane-packed path for small output widths (the module's common regime).
    g = 1
    if w_out < 128 and x.dtype in (jnp.float32, jnp.bfloat16):
        g = _pick_group(rows, w_out)
    if g >= 2 and g * w_out >= 128:
        out2 = _pad_lane_packed(x2, rows, w_eff, w_out, pad_l, g,
                                itemsize, pack, tile_rows)
    else:
        out2 = _pad_row_tiled(x2, rows, w_eff, w_out, pad_l, pad_r,
                              itemsize, pack, tile_rows)
    return out2.reshape(n, c, w_out)


class ReplicationPad1dNaive:
    """JAX/Pallas port of the PyTorch ReplicationPad1dNaive module."""

    def __init__(self, padding, detach=False):
        assert isinstance(padding, (list, tuple)) and len(padding) == 2
        self.padding = tuple(int(p) for p in padding)
        self.detach = detach  # kept for API parity; no forward-value effect

    def __call__(self, x):
        return replication_pad1d_naive(x, self.padding, detach=self.detach)


def _reference(x, padding):
    """Pure-JAX reference mirroring the sequential PyTorch semantics."""
    left, right = padding
    if left > 0:
        x = jnp.concatenate([x[:, :, :1]] * left + [x], axis=2)
    elif left < 0:
        x = x[:, :, -left:]
    if right > 0:
        x = jnp.concatenate([x] + [x[:, :, -1:]] * right, axis=2)
    elif right < 0:
        x = x[:, :, :right]
    return x


if __name__ == "__main__":
    key = jax.random.PRNGKey(0)
    ok = True

    def _check(name, x, padding):
        out = jax.block_until_ready(replication_pad1d_naive(x, padding))
        ref = _reference(x, padding)
        good = (out.shape == ref.shape) and bool(jnp.allclose(
            out.astype(jnp.float32), ref.astype(jnp.float32),
            rtol=1e-6, atol=1e-6))
        if not good:
            print(f"MISMATCH {name} padding={padding}: "
                  f"{out.shape} vs {ref.shape}")
        return good

    k0, k1, k2, k3, k4 = jax.random.split(key, 5)

    # Small module-sized input (batch=2, channels=4, width=16), f32.
    x_small = jax.random.normal(k0, (2, 4, 16), dtype=jnp.float32)
    for padding in [(3, 2), (0, 5), (-2, 3), (4, -3), (-1, -1), (0, 0),
                    (5, -18)]:
        ok &= _check("small_f32", x_small, padding)

    # Lane-packed f32 path (rows folded into lanes, exact 3x-bf16 matmul).
    x_pack = jax.random.normal(k1, (2, 32, 16), dtype=jnp.float32)
    ok &= _check("packed_f32", x_pack, (3, 2))

    # Lane-packed bf16 path with a crop (w_out = 127 < 128).
    x_bf16 = jax.random.normal(k2, (1, 40, 128), dtype=jnp.bfloat16)
    ok &= _check("packed_bf16", x_bf16, (2, -3))

    # Wide rows: general path with a multi-step row grid.
    x_wide = jax.random.normal(k3, (2, 64, 160), dtype=jnp.float32)
    ok &= _check("wide_f32", x_wide, (3, 5))

    # Partial last row block on the general path.
    x_part = jax.random.normal(k4, (2, 100, 160), dtype=jnp.float32)
    ok &= _check("partial_f32", x_part, (0, 8))

    # Integer dtype falls back to the row-tiled path.
    x_int = jax.random.randint(key, (2, 4, 16), -100, 100, dtype=jnp.int32)
    ok &= _check("int32", x_int, (1, 2))

    # Class wrapper parity.
    mod = ReplicationPad1dNaive((2, 1))
    out_mod = jax.block_until_ready(mod(x_small))
    ok &= bool(jnp.allclose(out_mod, _reference(x_small, (2, 1)),
                            rtol=1e-6, atol=1e-6))

    if ok:
        print("KERNEL_OK")
</pallas_src>

<mosaic_0001>
module attributes {stable_mosaic.version = 11 : i64} {
  func.func @_pad_rows_kernel(%arg0: i32, %arg1: memref<8x16xf32, #tpu.memory_space<vmem>>, %arg2: memref<8x21xf32, #tpu.memory_space<vmem>>) attributes {dimension_semantics = [#tpu.dimension_semantics<parallel>], iteration_bounds = array<i64: 1>, scalar_prefetch = 0 : i64, scratch_operands = 0 : i64, tpu.core_type = #tpu.core_type<tc>, window_params = [{transform_indices = @transform_0, window_bounds = array<i64: 8, 16>}, {transform_indices = @transform_1, window_bounds = array<i64: 8, 21>}]} {
    %c0 = arith.constant 0 : index
    %c0_0 = arith.constant 0 : index
    %0 = vector.load %arg1[%c0, %c0_0] : memref<8x16xf32, #tpu.memory_space<vmem>>, vector<8x16xf32>
    %c0_1 = arith.constant 0 : index
    %c3 = arith.constant 3 : index
    %1 = vector.load %arg2[%c0_1, %c3] : memref<8x21xf32, #tpu.memory_space<vmem>>, vector<8x16xf32>
    tpu.vector_store %arg2[%c0_1, %c3], %0 {strides = array<i32>} : memref<8x21xf32, #tpu.memory_space<vmem>>, vector<8x16xf32>,
    %2 = vector.extract_strided_slice %0 {offsets = [0, 0], sizes = [8, 1], strides = [1, 1]} : vector<8x16xf32> to vector<8x1xf32>
    %3 = vector.shape_cast %2 : vector<8x1xf32> to vector<8x1xf32>
    %4 = vector.broadcast %3 : vector<8x1xf32> to vector<8x3xf32>
    %c0_2 = arith.constant 0 : index
    %c0_3 = arith.constant 0 : index
    %5 = vector.load %arg2[%c0_2, %c0_3] : memref<8x21xf32, #tpu.memory_space<vmem>>, vector<8x3xf32>
    tpu.vector_store %arg2[%c0_2, %c0_3], %4 {strides = array<i32>} : memref<8x21xf32, #tpu.memory_space<vmem>>, vector<8x3xf32>,
    %6 = vector.extract_strided_slice %0 {offsets = [0, 15], sizes = [8, 1], strides = [1, 1]} : vector<8x16xf32> to vector<8x1xf32>
    %7 = vector.shape_cast %6 : vector<8x1xf32> to vector<8x1xf32>
    %8 = vector.broadcast %7 : vector<8x1xf32> to vector<8x2xf32>
    %c0_4 = arith.constant 0 : index
    %c19 = arith.constant 19 : index
    %9 = vector.load %arg2[%c0_4, %c19] : memref<8x21xf32, #tpu.memory_space<vmem>>, vector<8x2xf32>
    tpu.vector_store %arg2[%c0_4, %c19], %8 {strides = array<i32>} : memref<8x21xf32, #tpu.memory_space<vmem>>, vector<8x2xf32>,
    return
  }
  func.func @transform_0(%arg0: i32) -> (i32, i32) {
    %c0_i32 = arith.constant 0 : i32
    %c0_i32_0 = arith.constant 0 : i32
    return %arg0, %c0_i32 : i32, i32
  }
  func.func @transform_1(%arg0: i32) -> (i32, i32) {
    %c0_i32 = arith.constant 0 : i32
    %c0_i32_0 = arith.constant 0 : i32
    return %arg0, %c0_i32 : i32, i32
  }
}

</mosaic_0001>

<bundles_post_ra>
// kernel: tpu_custom_call.1
= control target key start
LH: loop header
LB: loop body
LE: loop exit
PB: predicated region body
PF: predicated region fallthrough
CT: control target
= control target key end

     0   :  { %6 = vsyncpa [#allocation3], 0  ;;  %s149_s0 = inlined_call_operand.hbm [shape: f32[8,16], index: 0, kind: input, shape index: {}]   ;;  %s150_s1 = inlined_call_operand.hbm [shape: f32[8,21], index: 1, kind: output, shape index: {}]  }
   0x1   :  { %7 = vsyncpa [#allocation4], 0  ;;  %s110_s6 = smov [#allocation2]   ;;  %s62_s10 = scalar_lea.hbm %s149_s0, 128 }
   0x2   :  { %s14_s7 = sshll.u32 %s110_s6, 4  ;;  %p63_p0 = scmp.ne.s32.totalorder %s149_s0, %s62_s10  ;;  %s15_s7 = int_to_ptr.vmem [resolvable:$true] %s14_s7 }
   0x3   :  { %p66_p1 = scmp.lt.u32.totalorder %s62_s10, %s149_s0 }
   0x5   :  { %p68_p2 = pnand %p66_p1, %p63_p0 }
   0x7   :  { %71 = shalt.err (!%p68_p2)
}
   0x8   :  { %s72_s15 = scalar_lea.vmem %s15_s7, 128  ;;  %p77_p4 = scmp.lt.s32.totalorder %s15_s7, %s15_s7 }
   0x9   :  { %p73_p3 = scmp.ne.s32.totalorder %s15_s7, %s72_s15  ;;  %p78_p5 = scmp.lt.s32.totalorder %s72_s15, %s72_s15 }
   0xb   :  { %p79_p6 = por %p78_p5, %p77_p4 }
   0xd   :  { %p80_p7 = pnand %p79_p6, %p73_p3 }
   0xf   :  { %83 = shalt.err (!%p80_p7)
}
  0x10   :  { %17 = dma.hbm_to_vmem [thread:$0]  %s149_s0, 128, %s15_s7, [#allocation3]  }
  0x11   :  { %106 = dma.done.wait [#allocation3], 128  }
  0x12   :  { %107 = vsyncadd [#allocation3], 4294967168  ;;  %v111_v0 = vmov 0   ;;  %v21_v1 = vld [vmem:[#allocation2] sm:$0xff]  ;;  %s112_s18 = smov 3   ;;  %v113_v2 = vmov 15  }
  0x13   :  { %60 = vset.pattern.permute.xlu0 %v111_v0  ;;  %23 = vrot.lane.b32.xlu1 %v21_v1, %s112_s18  ;;  %vm26_vm0 = vcmask 154648   ;;  %vm32_vm1 = vcmask 23552   ;;  %s114_s19 = smov [#allocation5]   ;;  %vm38_vm2 = vcmask 171160  }
  0x14   :  { %29 = vperm.xlu0 %60, %v21_v1   ;;  %s46_s20 = sshll.u32 %s114_s19, 4  ;;  %s47_s20 = int_to_ptr.vmem [resolvable:$true] %s46_s20 }
  0x15   :  { %s84_s0 = scalar_lea.vmem %s47_s20, 128  ;;  %p89_p9 = scmp.lt.s32.totalorder %s47_s20, %s47_s20 }
  0x16   :  { %p85_p8 = scmp.ne.s32.totalorder %s47_s20, %s84_s0  ;;  %p90_p10 = scmp.lt.s32.totalorder %s84_s0, %s84_s0 }
  0x18   :  { %61 = vset.pattern.permute.xlu0 %v113_v2  ;;  %p91_p11 = por %p90_p10, %p89_p9 }
  0x19   :  { %35 = vperm.xlu0 %61, %v21_v1  }
  0x1a   :  { %p92_p12 = pnand %p91_p11, %p85_p8 }
  0x85   :  { %v24_v3 = vpop.permute.xlu1 %23 }
  0x86   :  { %27 = vst.msk [vmem:[#allocation5] sm:$0xff] %vm26_vm0, %v24_v3 }
  0x93   :  { %v30_v4 = vpop.permute.xlu0 %29 }
  0x94   :  { %33 = vst.msk [vmem:[#allocation5] sm:$0xff] %vm32_vm1, %v30_v4 }
  0x98   :  { %v36_v5 = vpop.permute.xlu0 %35 }
  0x99   :  { %39 = vst.msk [vmem:[#allocation5] sm:$0xff] %vm38_vm2, %v36_v5 }
  0x9a   :  { %95 = shalt.err (!%p92_p12)
}
  0x9b   :  { %s96_s23 = scalar_lea.hbm %s150_s1, 128 }
  0x9c   :  { %p97_p13 = scmp.ne.s32.totalorder %s150_s1, %s96_s23  ;;  %p100_p0 = scmp.lt.u32.totalorder %s96_s23, %s150_s1 }
  0x9e   :  { %p102_p1 = pnand %p100_p0, %p97_p13 }
  0xa0   :  { %105 = shalt.err (!%p102_p1)
}
  0xa1   :  { %49 = dma.vmem_to_hbm [thread:$0]  %s47_s20, 128, %s150_s1, [#allocation4]  }
  0xa2   :  { %108 = dma.done.wait [#allocation4], 128  }
  0xa3   :  { %109 = vsyncadd [#allocation4], 4294967168 }
  0xa4   :  { %53 = vsyncpa [#allocation3], 1 }
  0xa5   :  { %54 = vsyncpa [#allocation4], 1 }

</bundles_post_ra>
